<compile_context>
chip_gen: v7x
topology: tpu7x:2x2x1
jax: 0.10.0
libtpu: 0.0.40
codegen_flags: <defaults>
</compile_context>

<pallas_src>
from functools import partial

import jax
import jax.numpy as jnp
from jax.experimental import pallas as pl
from jax.experimental.pallas import tpu as pltpu


def _determ_policy_kernel(obs_ref, w_ih_ref, w_hh_ref, b_rnn_ref,
                          w1_ref, b1_ref, w2_ref, b2_ref,
                          scale_ref, mid_ref, out_ref,
                          *, batch, seq_len):
    """obs_ref: (B*T, D) flattened batch-major. out_ref: (B, A)."""
    B, T = batch, seq_len
    H = w_hh_ref.shape[0]

    # --- hoisted input projection: one matmul for all (b, t) rows ----------
    # (B*T, D) @ (D, H) + (1, H)  ->  (B*T, H), then view as (B, T, H).
    x_proj = (jnp.dot(obs_ref[...], w_ih_ref[...],
                      preferred_element_type=jnp.float32)
              + b_rnn_ref[...])
    x_proj = x_proj.reshape(B, T, H)

    w_hh = w_hh_ref[...]                      # (H, H), loaded once

    # --- RNN-tanh recurrence, h carried in registers, statically unrolled --
    h = jnp.zeros((B, H), jnp.float32)
    for t in range(T):                        # T is a compile-time constant
        h = jnp.tanh(x_proj[:, t, :]
                     + jnp.dot(h, w_hh, preferred_element_type=jnp.float32))

    # --- MLP pi head: Linear -> relu -> Linear -> identity, then squash ----
    z1 = jnp.maximum(
        jnp.dot(h, w1_ref[...], preferred_element_type=jnp.float32)
        + b1_ref[...], 0.0)
    z2 = (jnp.dot(z1, w2_ref[...], preferred_element_type=jnp.float32)
          + b2_ref[...])
    out_ref[...] = scale_ref[...] * jnp.tanh(z2) + mid_ref[...]


def determ_policy(obs_btd, params):
    """obs_btd: (B, T, obs_dim) float32, batch_first like PyTorch."""
    B, T, D = obs_btd.shape
    A = params["w2"].shape[1]

    # Free leading-dim collapse (no transpose, no HBM round-trip).
    obs_flat = obs_btd.reshape(B * T, D)

    inputs = (
        obs_flat,
        params["w_ih"], params["w_hh"], params["b_rnn"],
        params["w1"], params["b1"], params["w2"], params["b2"],
        params["scale"], params["mid"],
    )
    vmem = lambda: pl.BlockSpec(memory_space=pltpu.MemorySpace.VMEM)

    out = pl.pallas_call(
        partial(_determ_policy_kernel, batch=B, seq_len=T),
        out_shape=jax.ShapeDtypeStruct((B, A), jnp.float32),
        in_specs=[vmem() for _ in inputs],
        out_specs=vmem(),
    )(*inputs)
    return out


def make_params(key, obs_dim, hidden_sizes, act_dim, act_high, act_low):
    ks = jax.random.split(key, 8)
    H, H2 = hidden_sizes
    s = 0.1
    params = {
        # RNN weights (stored already transposed: (in, out))
        "w_ih": s * jax.random.normal(ks[0], (obs_dim, H), jnp.float32),
        "w_hh": s * jax.random.normal(ks[1], (H, H), jnp.float32),
        "b_rnn": s * jax.random.normal(ks[2], (1, H), jnp.float32),  # b_ih + b_hh
        # MLP pi
        "w1": s * jax.random.normal(ks[3], (H, H2), jnp.float32),
        "b1": s * jax.random.normal(ks[4], (1, H2), jnp.float32),
        "w2": s * jax.random.normal(ks[5], (H2, act_dim), jnp.float32),
        "b2": s * jax.random.normal(ks[6], (1, act_dim), jnp.float32),
        # action range buffers
        "scale": ((act_high - act_low) / 2.0).reshape(1, act_dim),
        "mid": ((act_high + act_low) / 2.0).reshape(1, act_dim),
    }
    return params


def determ_policy_ref(obs_btd, params):
    """Pure-JAX reference with PyTorch-equivalent math."""
    B, T, D = obs_btd.shape
    H = params["w_ih"].shape[1]
    h = jnp.zeros((B, H), jnp.float32)
    for t in range(T):
        h = jnp.tanh(obs_btd[:, t, :] @ params["w_ih"]
                     + h @ params["w_hh"] + params["b_rnn"])
    z1 = jnp.maximum(h @ params["w1"] + params["b1"], 0.0)
    z2 = z1 @ params["w2"] + params["b2"]
    return params["scale"] * jnp.tanh(z2) + params["mid"]


if __name__ == "__main__":
    B, T = 4, 8
    obs_dim = 16
    hidden_sizes = (32, 32)
    act_dim = 2

    key = jax.random.PRNGKey(0)
    k_obs, k_par = jax.random.split(key)

    obs = jax.random.normal(k_obs, (B, T, obs_dim), jnp.float32)
    act_high = jnp.array([1.0, 2.0], jnp.float32)
    act_low = jnp.array([-1.0, 0.0], jnp.float32)
    params = make_params(k_par, obs_dim, hidden_sizes, act_dim, act_high, act_low)

    action = determ_policy(obs, params)
    action = jax.block_until_ready(action)

    ref = determ_policy_ref(obs, params)
    assert action.shape == (B, act_dim)
    assert jnp.allclose(action, ref, atol=1e-5, rtol=1e-5), (action, ref)

    print("KERNEL_OK")
</pallas_src>

<mosaic_0001>
module attributes {stable_mosaic.version = 11 : i64} {
  func.func @_determ_policy_kernel(%arg0: memref<32x16xf32, #tpu.memory_space<vmem>>, %arg1: memref<16x32xf32, #tpu.memory_space<vmem>>, %arg2: memref<32x32xf32, #tpu.memory_space<vmem>>, %arg3: memref<1x32xf32, #tpu.memory_space<vmem>>, %arg4: memref<32x32xf32, #tpu.memory_space<vmem>>, %arg5: memref<1x32xf32, #tpu.memory_space<vmem>>, %arg6: memref<32x2xf32, #tpu.memory_space<vmem>>, %arg7: memref<1x2xf32, #tpu.memory_space<vmem>>, %arg8: memref<1x2xf32, #tpu.memory_space<vmem>>, %arg9: memref<1x2xf32, #tpu.memory_space<vmem>>, %arg10: memref<4x2xf32, #tpu.memory_space<vmem>>) attributes {dimension_semantics = [], scalar_prefetch = 0 : i64, scratch_operands = 0 : i64, tpu.core_type = #tpu.core_type<tc>} {
    %c0 = arith.constant 0 : index
    %c0_0 = arith.constant 0 : index
    %0 = vector.load %arg0[%c0, %c0_0] : memref<32x16xf32, #tpu.memory_space<vmem>>, vector<32x16xf32>
    %c0_1 = arith.constant 0 : index
    %c0_2 = arith.constant 0 : index
    %1 = vector.load %arg1[%c0_1, %c0_2] : memref<16x32xf32, #tpu.memory_space<vmem>>, vector<16x32xf32>
    %cst = arith.constant dense<0.000000e+00> : vector<32x32xf32>
    %2 = tpu.matmul %0, %1, %cst {dimension_numbers = #tpu.dot_dimension_numbers<[1], [0], [0], [1], [0, 0, 1, 1], [], []>} : vector<32x16xf32>, vector<16x32xf32>, vector<32x32xf32> -> vector<32x32xf32>
    %c0_3 = arith.constant 0 : index
    %c0_4 = arith.constant 0 : index
    %3 = vector.load %arg3[%c0_3, %c0_4] : memref<1x32xf32, #tpu.memory_space<vmem>>, vector<1x32xf32>
    %4 = vector.broadcast %3 : vector<1x32xf32> to vector<32x32xf32>
    %5 = arith.addf %2, %4 : vector<32x32xf32>
    %6 = vector.shape_cast %5 : vector<32x32xf32> to vector<4x8x32xf32>
    %c0_5 = arith.constant 0 : index
    %c0_6 = arith.constant 0 : index
    %7 = vector.load %arg2[%c0_5, %c0_6] : memref<32x32xf32, #tpu.memory_space<vmem>>, vector<32x32xf32>
    %cst_7 = arith.constant 0.000000e+00 : f32
    %8 = vector.broadcast %cst_7 : f32 to vector<4x32xf32>
    %9 = vector.extract_strided_slice %6 {offsets = [0, 0, 0], sizes = [4, 1, 32], strides = [1, 1, 1]} : vector<4x8x32xf32> to vector<4x1x32xf32>
    %10 = vector.shape_cast %9 : vector<4x1x32xf32> to vector<4x32xf32>
    %cst_8 = arith.constant dense<0.000000e+00> : vector<4x32xf32>
    %11 = tpu.matmul %8, %7, %cst_8 {dimension_numbers = #tpu.dot_dimension_numbers<[1], [0], [0], [1], [0, 0, 1, 1], [], []>} : vector<4x32xf32>, vector<32x32xf32>, vector<4x32xf32> -> vector<4x32xf32>
    %12 = arith.addf %10, %11 : vector<4x32xf32>
    %13 = math.tanh %12 : vector<4x32xf32>
    %14 = vector.extract_strided_slice %6 {offsets = [0, 1, 0], sizes = [4, 1, 32], strides = [1, 1, 1]} : vector<4x8x32xf32> to vector<4x1x32xf32>
    %15 = vector.shape_cast %14 : vector<4x1x32xf32> to vector<4x32xf32>
    %cst_9 = arith.constant dense<0.000000e+00> : vector<4x32xf32>
    %16 = tpu.matmul %13, %7, %cst_9 {dimension_numbers = #tpu.dot_dimension_numbers<[1], [0], [0], [1], [0, 0, 1, 1], [], []>} : vector<4x32xf32>, vector<32x32xf32>, vector<4x32xf32> -> vector<4x32xf32>
    %17 = arith.addf %15, %16 : vector<4x32xf32>
    %18 = math.tanh %17 : vector<4x32xf32>
    %19 = vector.extract_strided_slice %6 {offsets = [0, 2, 0], sizes = [4, 1, 32], strides = [1, 1, 1]} : vector<4x8x32xf32> to vector<4x1x32xf32>
    %20 = vector.shape_cast %19 : vector<4x1x32xf32> to vector<4x32xf32>
    %cst_10 = arith.constant dense<0.000000e+00> : vector<4x32xf32>
    %21 = tpu.matmul %18, %7, %cst_10 {dimension_numbers = #tpu.dot_dimension_numbers<[1], [0], [0], [1], [0, 0, 1, 1], [], []>} : vector<4x32xf32>, vector<32x32xf32>, vector<4x32xf32> -> vector<4x32xf32>
    %22 = arith.addf %20, %21 : vector<4x32xf32>
    %23 = math.tanh %22 : vector<4x32xf32>
    %24 = vector.extract_strided_slice %6 {offsets = [0, 3, 0], sizes = [4, 1, 32], strides = [1, 1, 1]} : vector<4x8x32xf32> to vector<4x1x32xf32>
    %25 = vector.shape_cast %24 : vector<4x1x32xf32> to vector<4x32xf32>
    %cst_11 = arith.constant dense<0.000000e+00> : vector<4x32xf32>
    %26 = tpu.matmul %23, %7, %cst_11 {dimension_numbers = #tpu.dot_dimension_numbers<[1], [0], [0], [1], [0, 0, 1, 1], [], []>} : vector<4x32xf32>, vector<32x32xf32>, vector<4x32xf32> -> vector<4x32xf32>
    %27 = arith.addf %25, %26 : vector<4x32xf32>
    %28 = math.tanh %27 : vector<4x32xf32>
    %29 = vector.extract_strided_slice %6 {offsets = [0, 4, 0], sizes = [4, 1, 32], strides = [1, 1, 1]} : vector<4x8x32xf32> to vector<4x1x32xf32>
    %30 = vector.shape_cast %29 : vector<4x1x32xf32> to vector<4x32xf32>
    %cst_12 = arith.constant dense<0.000000e+00> : vector<4x32xf32>
    %31 = tpu.matmul %28, %7, %cst_12 {dimension_numbers = #tpu.dot_dimension_numbers<[1], [0], [0], [1], [0, 0, 1, 1], [], []>} : vector<4x32xf32>, vector<32x32xf32>, vector<4x32xf32> -> vector<4x32xf32>
    %32 = arith.addf %30, %31 : vector<4x32xf32>
    %33 = math.tanh %32 : vector<4x32xf32>
    %34 = vector.extract_strided_slice %6 {offsets = [0, 5, 0], sizes = [4, 1, 32], strides = [1, 1, 1]} : vector<4x8x32xf32> to vector<4x1x32xf32>
    %35 = vector.shape_cast %34 : vector<4x1x32xf32> to vector<4x32xf32>
    %cst_13 = arith.constant dense<0.000000e+00> : vector<4x32xf32>
    %36 = tpu.matmul %33, %7, %cst_13 {dimension_numbers = #tpu.dot_dimension_numbers<[1], [0], [0], [1], [0, 0, 1, 1], [], []>} : vector<4x32xf32>, vector<32x32xf32>, vector<4x32xf32> -> vector<4x32xf32>
    %37 = arith.addf %35, %36 : vector<4x32xf32>
    %38 = math.tanh %37 : vector<4x32xf32>
    %39 = vector.extract_strided_slice %6 {offsets = [0, 6, 0], sizes = [4, 1, 32], strides = [1, 1, 1]} : vector<4x8x32xf32> to vector<4x1x32xf32>
    %40 = vector.shape_cast %39 : vector<4x1x32xf32> to vector<4x32xf32>
    %cst_14 = arith.constant dense<0.000000e+00> : vector<4x32xf32>
    %41 = tpu.matmul %38, %7, %cst_14 {dimension_numbers = #tpu.dot_dimension_numbers<[1], [0], [0], [1], [0, 0, 1, 1], [], []>} : vector<4x32xf32>, vector<32x32xf32>, vector<4x32xf32> -> vector<4x32xf32>
    %42 = arith.addf %40, %41 : vector<4x32xf32>
    %43 = math.tanh %42 : vector<4x32xf32>
    %44 = vector.extract_strided_slice %6 {offsets = [0, 7, 0], sizes = [4, 1, 32], strides = [1, 1, 1]} : vector<4x8x32xf32> to vector<4x1x32xf32>
    %45 = vector.shape_cast %44 : vector<4x1x32xf32> to vector<4x32xf32>
    %cst_15 = arith.constant dense<0.000000e+00> : vector<4x32xf32>
    %46 = tpu.matmul %43, %7, %cst_15 {dimension_numbers = #tpu.dot_dimension_numbers<[1], [0], [0], [1], [0, 0, 1, 1], [], []>} : vector<4x32xf32>, vector<32x32xf32>, vector<4x32xf32> -> vector<4x32xf32>
    %47 = arith.addf %45, %46 : vector<4x32xf32>
    %48 = math.tanh %47 : vector<4x32xf32>
    %c0_16 = arith.constant 0 : index
    %c0_17 = arith.constant 0 : index
    %49 = vector.load %arg4[%c0_16, %c0_17] : memref<32x32xf32, #tpu.memory_space<vmem>>, vector<32x32xf32>
    %cst_18 = arith.constant dense<0.000000e+00> : vector<4x32xf32>
    %50 = tpu.matmul %48, %49, %cst_18 {dimension_numbers = #tpu.dot_dimension_numbers<[1], [0], [0], [1], [0, 0, 1, 1], [], []>} : vector<4x32xf32>, vector<32x32xf32>, vector<4x32xf32> -> vector<4x32xf32>
    %c0_19 = arith.constant 0 : index
    %c0_20 = arith.constant 0 : index
    %51 = vector.load %arg5[%c0_19, %c0_20] : memref<1x32xf32, #tpu.memory_space<vmem>>, vector<1x32xf32>
    %52 = vector.broadcast %51 : vector<1x32xf32> to vector<4x32xf32>
    %53 = arith.addf %50, %52 : vector<4x32xf32>
    %cst_21 = arith.constant 0.000000e+00 : f32
    %54 = vector.broadcast %cst_21 : f32 to vector<4x32xf32>
    %55 = arith.maximumf %53, %54 : vector<4x32xf32>
    %c0_22 = arith.constant 0 : index
    %c0_23 = arith.constant 0 : index
    %56 = vector.load %arg6[%c0_22, %c0_23] : memref<32x2xf32, #tpu.memory_space<vmem>>, vector<32x2xf32>
    %cst_24 = arith.constant dense<0.000000e+00> : vector<4x2xf32>
    %57 = tpu.matmul %55, %56, %cst_24 {dimension_numbers = #tpu.dot_dimension_numbers<[1], [0], [0], [1], [0, 0, 1, 1], [], []>} : vector<4x32xf32>, vector<32x2xf32>, vector<4x2xf32> -> vector<4x2xf32>
    %c0_25 = arith.constant 0 : index
    %c0_26 = arith.constant 0 : index
    %58 = vector.load %arg7[%c0_25, %c0_26] : memref<1x2xf32, #tpu.memory_space<vmem>>, vector<1x2xf32>
    %59 = vector.broadcast %58 : vector<1x2xf32> to vector<4x2xf32>
    %60 = arith.addf %57, %59 : vector<4x2xf32>
    %c0_27 = arith.constant 0 : index
    %c0_28 = arith.constant 0 : index
    %61 = vector.load %arg8[%c0_27, %c0_28] : memref<1x2xf32, #tpu.memory_space<vmem>>, vector<1x2xf32>
    %62 = math.tanh %60 : vector<4x2xf32>
    %63 = vector.broadcast %61 : vector<1x2xf32> to vector<4x2xf32>
    %64 = arith.mulf %63, %62 : vector<4x2xf32>
    %c0_29 = arith.constant 0 : index
    %c0_30 = arith.constant 0 : index
    %65 = vector.load %arg9[%c0_29, %c0_30] : memref<1x2xf32, #tpu.memory_space<vmem>>, vector<1x2xf32>
    %66 = vector.broadcast %65 : vector<1x2xf32> to vector<4x2xf32>
    %67 = arith.addf %64, %66 : vector<4x2xf32>
    %c0_31 = arith.constant 0 : index
    %c0_32 = arith.constant 0 : index
    %68 = vector.load %arg10[%c0_31, %c0_32] : memref<4x2xf32, #tpu.memory_space<vmem>>, vector<4x2xf32>
    tpu.vector_store %arg10[%c0_31, %c0_32], %67 {strides = array<i32>} : memref<4x2xf32, #tpu.memory_space<vmem>>, vector<4x2xf32>,
    return
  }
}

</mosaic_0001>

<bundles_post_ra>
// kernel: tpu_custom_call.1
= control target key start
LH: loop header
LB: loop body
LE: loop exit
PB: predicated region body
PF: predicated region fallthrough
CT: control target
= control target key end

     0   :  { %vm48_vm0 = vcmask 130048   ;;  %v1465_v0 = vmov 0.0|0.0   ;;  %vm1466_vm1 = vmmov 0   ;;  %v1467_v4 = vmov 0.0   ;;  %s1733_s1 = inlined_call_operand.vmem [shape: f32[16,32], index: 1, kind: input, shape index: {}]   ;;  %s1734_s2 = inlined_call_operand.vmem [shape: f32[32,32], index: 2, kind: input, shape index: {}]   ;;  %s1735_s0 = inlined_call_operand.vmem [shape: f32[32,16], index: 0, kind: input, shape index: {}]   ;;  %s1736_s3 = inlined_call_operand.vmem [shape: f32[1,32], index: 3, kind: input, shape index: {}]   ;;  %s1737_s4 = inlined_call_operand.vmem [shape: f32[32,32], index: 4, kind: input, shape index: {}]   ;;  %s1738_s6 = inlined_call_operand.vmem [shape: f32[32,2], index: 6, kind: input, shape index: {}]   ;;  %s1739_s5 = inlined_call_operand.vmem [shape: f32[1,32], index: 5, kind: input, shape index: {}]   ;;  %s1740_s7 = inlined_call_operand.vmem [shape: f32[1,2], index: 7, kind: input, shape index: {}]   ;;  %s1741_s8 = inlined_call_operand.vmem [shape: f32[1,2], index: 8, kind: input, shape index: {}]   ;;  %s1742_s9 = inlined_call_operand.vmem [shape: f32[1,2], index: 9, kind: input, shape index: {}]   ;;  %s1743_s10 = inlined_call_operand.vmem [shape: f32[4,2], index: 10, kind: output, shape index: {}]  }
   0x1   :  { %1336 = vmatprep.subr.bf16.mxu1 %v1465_v0  ;;  %v39_v1 = vld [vmem:[%s1733_s1] sm:$0xff]  ;;  %v40_v2 = vld [vmem:[%s1733_s1 + $0x8] sm:$0xff]  ;;  %1230 = vmatprep.mubr.msk.f32.mxu1 %vm1466_vm1, %v1467_v4  ;;  %v148_v9 = vld [vmem:[%s1734_s2 + $0x10] sm:$0xff]  ;;  %vm245_vm2 = vcmask 1041409   ;;  %vm248_vm3 = vcmask 1042434   ;;  %vm251_vm4 = vcmask 1043459  }
   0x2   :  { %v146_v3 = vld [vmem:[%s1734_s2] sm:$0xff]  ;;  %v1332_v5 = vpack.c.bf16 %v40_v2, %v39_v1  ;;  %v147_v6 = vld [vmem:[%s1734_s2 + $0x8] sm:$0xff]  ;;  %v149_v10 = vld [vmem:[%s1734_s2 + $0x18] sm:$0xff]  ;;  %vm150_vm5 = vcmask 261120   ;;  %vm1132_vm6 = vcmask 11264  }
   0x3   :  { %v35_v7 = vld [vmem:[%s1735_s0] sm:$0xff]  ;;  %v1541_v8 = vpack.c.bf16 %v147_v6, %v146_v3  ;;  %v36_v11 = vld [vmem:[%s1735_s0 + $0x8] sm:$0xff]  ;;  %v1554_v12 = vpack.c.bf16 %v149_v10, %v148_v9  ;;  %v37_v13 = vld [vmem:[%s1735_s0 + $0x10] sm:$0xff] }
   0x4   :  { %1216 = vmatprep.mubr.msk.f32.mxu0 %vm48_vm0, %v35_v7  ;;  %1333 = vmatprep.subr.bf16.mxu0 %v1332_v5  ;;  %v38_v14 = vld [vmem:[%s1735_s0 + $0x18] sm:$0xff]  ;;  %v1138_v15 = vld [vmem:[%s1736_s3] ss:$0 sm:$0xff] }
   0x5   :  { %1338 = vmatpush3.bf16.msra.mxu1 %v1541_v8  ;;  %1335 = vmatpush3.bf16.msra.mxu0 %v1332_v5 }
   0x6   :  { %1339 = vmatprep.subr.bf16.mxu1 %v1465_v0  ;;  %1342 = vmatprep.subr.bf16.mxu0 %v1465_v0 }
   0x8   :  { %1217 = vmatmul.mubr.msk.f32.vlgmr.msra.gmra.mrb[0].mxu0 %vm48_vm0, %v36_v11 }
   0x9   :  { %1341 = vmatpush3.bf16.msra.mxu1 %v1554_v12  ;;  %1219 = vmatprep.mubr.msk.f32.mxu0 %vm48_vm0, %v37_v13 }
   0xa   :  { %1344 = vmatpush3.bf16.msra.mxu0 %v1541_v8  ;;  %1348 = vmatprep.subr.bf16.mxu1 %v1465_v0 }
   0xb   :  { %1345 = vmatprep.subr.bf16.mxu0 %v1465_v0 }
   0xc   :  { %1231 = vmatmul.mubr.f32.vlgmr.msra.gmra.mrb[0].mxu1 %v1467_v4  ;;  %1220 = vmatmul.mubr.msk.f32.gmra.mrb[2].mxu0 %vm48_vm0, %v38_v14 }
   0xd   :  { %1241 = vmatprep.mubr.msk.f32.mxu0 %vm1466_vm1, %v1467_v4  ;;  %1350 = vmatpush3.bf16.msra.mxu1 %v1541_v8 }
   0xe   :  { %1347 = vmatpush3.bf16.msra.mxu0 %v1554_v12  ;;  %1351 = vmatprep.subr.bf16.mxu1 %v1465_v0 }
   0xf   :  { %1252 = vmatprep.mubr.msk.f32.mxu1 %vm1466_vm1, %v1467_v4  ;;  %1354 = vmatprep.subr.bf16.mxu0 %v1465_v0 }
  0x11   :  { %1353 = vmatpush3.bf16.msra.mxu1 %v1554_v12 }
  0x12   :  { %1360 = vmatprep.subr.bf16.mxu1 %v1465_v0 }
  0xdb   :  { %v1218_v16 = vpop.f32.mrb[0].mxu0 }
  0xdc   :  { %v127_v17 = vpop.f32.mrb[1].mxu0  ;;  %v1587_v19 = vadd.f32 %v1218_v16, %v1138_v15 }
  0xdd   :  { %v1585_v18 = vadd.f32 %v1138_v15, %v127_v17 }
  0xdf   :  { %v220_v20 = vpop.f32.mrb[0].mxu1  ;;  %v1221_v21 = vpop.f32.mrb[2].mxu0 }
  0xe0   :  { %v225_v22 = vrot.slane %v220_v20, 1  ;;  %v226_v23 = vrot.slane %v220_v20, 2  ;;  %v227_v24 = vrot.slane %v220_v20, 3  ;;  %v232_v25 = vadd.f32 %v220_v20, %v1585_v18  ;;  %v1232_v26 = vpop.f32.mrb[1].mxu1  ;;  %v137_v27 = vpop.f32.mrb[3].mxu0 }
  0xe1   :  { %v1590_v28 = vadd.f32 %v1221_v21, %v1138_v15  ;;  %v1592_v29 = vadd.f32 %v1138_v15, %v137_v27 }
  0xe2   :  { %v233_v30 = vadd.f32 %v225_v22, %v1587_v19  ;;  %1399 = vtanh.f32 %v232_v25 }
  0xe3   :  { %v234_v31 = vadd.f32 %v226_v23, %v1592_v29  ;;  %v235_v32 = vadd.f32 %v227_v24, %v1590_v28 }
  0xe4   :  { %1401 = vtanh.f32 %v233_v30 }
  0xe5   :  { %1403 = vtanh.f32 %v234_v31 }
  0xe6   :  { %1405 = vtanh.f32 %v235_v32 }
  0xec   :  { %v1400_v33 = vpop.eup %1399 }
  0xee   :  { %v1402_v34 = vpop.eup %1401 }
  0xef   :  { %v1404_v35 = vpop.eup %1403  ;;  %v244_v36 = vrot.slane %v1402_v34, 7 }
  0xf0   :  { %v1406_v37 = vpop.eup %1405  ;;  %v247_v38 = vrot.slane %v1404_v35, 6 }
  0xf1   :  { %v246_v39 = vsel %vm245_vm2, %v244_v36, %v1400_v33  ;;  %v250_v40 = vrot.slane %v1406_v37, 5 }
  0xf2   :  { %v249_v41 = vsel %vm248_vm3, %v247_v38, %v246_v39 }
  0xf3   :  { %v252_v42 = vsel %vm251_vm4, %v250_v40, %v249_v41 }
  0xf4   :  { %1242 = vmatmul.mubr.msk.f32.vlgmr.msra.gmra.mrb[4].mxu0 %vm150_vm5, %v252_v42 }
  0xf5   :  { %1356 = vmatpush3.bf16.msra.mxu0 %v1541_v8  ;;  %1263 = vmatprep.mubr.msk.f32.mxu0 %vm1466_vm1, %v1467_v4 }
  0xf6   :  { %1357 = vmatprep.subr.bf16.mxu0 %v1465_v0 }
  0xf9   :  { %1359 = vmatpush3.bf16.msra.mxu0 %v1554_v12 }
  0xfa   :  { %1366 = vmatprep.subr.bf16.mxu0 %v1465_v0 }
 0x1c7   :  { %v321_v43 = vpop.f32.mrb[4].mxu0 }
 0x1c8   :  { %v326_v44 = vrot.slane %v321_v43, 7  ;;  %v327_v45 = vrot.slane %v321_v43, 1  ;;  %v328_v46 = vrot.slane %v321_v43, 2  ;;  %v334_v47 = vadd.f32 %v321_v43, %v1587_v19  ;;  %v1243_v48 = vpop.f32.mrb[5].mxu0 }
 0x1ca   :  { %v333_v49 = vadd.f32 %v326_v44, %v1585_v18  ;;  %v335_v50 = vadd.f32 %v327_v45, %v1592_v29  ;;  %v336_v51 = vadd.f32 %v328_v46, %v1590_v28  ;;  %1407 = vtanh.f32 %v334_v47 }
 0x1cc   :  { %1409 = vtanh.f32 %v333_v49 }
 0x1cd   :  { %1411 = vtanh.f32 %v335_v50 }
 0x1ce   :  { %1413 = vtanh.f32 %v336_v51 }
 0x1d4   :  { %v1408_v52 = vpop.eup %1407 }
 0x1d6   :  { %v1410_v53 = vpop.eup %1409 }
 0x1d7   :  { %v1412_v54 = vpop.eup %1411  ;;  %v345_v55 = vrot.slane %v1410_v53, 1 }
 0x1d8   :  { %v1414_v56 = vpop.eup %1413  ;;  %v347_v57 = vrot.slane %v1412_v54, 7 }
 0x1d9   :  { %v346_v58 = vsel %vm245_vm2, %v1408_v52, %v345_v55  ;;  %v349_v59 = vrot.slane %v1414_v56, 6 }
 0x1da   :  { %v348_v60 = vsel %vm248_vm3, %v347_v57, %v346_v58 }
 0x1db   :  { %v350_v61 = vsel %vm251_vm4, %v349_v59, %v348_v60 }
 0x1dc   :  { %1253 = vmatmul.mubr.msk.f32.vlgmr.msra.gmra.mrb[2].mxu1 %vm150_vm5, %v350_v61 }
 0x1dd   :  { %1362 = vmatpush3.bf16.msra.mxu1 %v1541_v8  ;;  %1274 = vmatprep.mubr.msk.f32.mxu1 %vm1466_vm1, %v1467_v4 }
 0x1de   :  { %1363 = vmatprep.subr.bf16.mxu1 %v1465_v0 }
 0x1e1   :  { %1365 = vmatpush3.bf16.msra.mxu1 %v1554_v12 }
 0x1e2   :  { %1372 = vmatprep.subr.bf16.mxu1 %v1465_v0 }
 0x2af   :  { %v419_v62 = vpop.f32.mrb[2].mxu1 }
 0x2b0   :  { %v424_v63 = vrot.slane %v419_v62, 6  ;;  %v425_v1 = vrot.slane %v419_v62, 7  ;;  %v426_v2 = vrot.slane %v419_v62, 1  ;;  %v1254_v3 = vpop.f32.mrb[3].mxu1  ;;  %v433_v9 = vadd.f32 %v419_v62, %v1592_v29 }
 0x2b2   :  { %v431_v5 = vadd.f32 %v424_v63, %v1585_v18  ;;  %v432_v6 = vadd.f32 %v425_v1, %v1587_v19  ;;  %v434_v7 = vadd.f32 %v426_v2, %v1590_v28 }
 0x2b4   :  { %1415 = vtanh.f32 %v431_v5 }
 0x2b5   :  { %1417 = vtanh.f32 %v432_v6 }
 0x2b6   :  { %1419 = vtanh.f32 %v434_v7 }
 0x2b7   :  { %1421 = vtanh.f32 %v433_v9 }
 0x2be   :  { %v1416_v10 = vpop.eup %1415 }
 0x2bf   :  { %v1418_v11 = vpop.eup %1417  ;;  %v443_v13 = vrot.slane %v1416_v10, 2 }
 0x2c0   :  { %v1420_v14 = vpop.eup %1419  ;;  %v444_v15 = vrot.slane %v1418_v11, 1 }
 0x2c1   :  { %v1422_v16 = vpop.eup %1421  ;;  %v447_v20 = vrot.slane %v1420_v14, 7 }
 0x2c2   :  { %v445_v17 = vsel %vm245_vm2, %v444_v15, %v443_v13 }
 0x2c3   :  { %v446_v21 = vsel %vm248_vm3, %v1422_v16, %v445_v17 }
 0x2c4   :  { %v448_v22 = vsel %vm251_vm4, %v447_v20, %v446_v21 }
 0x2c5   :  { %1264 = vmatmul.mubr.msk.f32.vlgmr.msra.gmra.mrb[6].mxu0 %vm150_vm5, %v448_v22 }
 0x2c6   :  { %1368 = vmatpush3.bf16.msra.mxu0 %v1541_v8  ;;  %1285 = vmatprep.mubr.msk.f32.mxu0 %vm1466_vm1, %v1467_v4 }
 0x2c7   :  { %1369 = vmatprep.subr.bf16.mxu0 %v1465_v0 }
 0x2ca   :  { %1371 = vmatpush3.bf16.msra.mxu0 %v1554_v12 }
 0x2cb   :  { %1378 = vmatprep.subr.bf16.mxu0 %v1465_v0 }
 0x398   :  { %v517_v23 = vpop.f32.mrb[6].mxu0 }
 0x399   :  { %v522_v24 = vrot.slane %v517_v23, 5  ;;  %v523_v25 = vrot.slane %v517_v23, 6  ;;  %v524_v26 = vrot.slane %v517_v23, 7  ;;  %v1265_v27 = vpop.f32.mrb[7].mxu0  ;;  %v532_v33 = vadd.f32 %v517_v23, %v1590_v28 }
 0x39b   :  { %v529_v30 = vadd.f32 %v522_v24, %v1585_v18  ;;  %v530_v31 = vadd.f32 %v523_v25, %v1587_v19  ;;  %v531_v32 = vadd.f32 %v524_v26, %v1592_v29 }
 0x39d   :  { %1423 = vtanh.f32 %v529_v30 }
 0x39e   :  { %1425 = vtanh.f32 %v530_v31 }
 0x39f   :  { %1427 = vtanh.f32 %v531_v32 }
 0x3a0   :  { %1429 = vtanh.f32 %v532_v33 }
 0x3a7   :  { %v1424_v34 = vpop.eup %1423 }
 0x3a8   :  { %v1426_v35 = vpop.eup %1425  ;;  %v541_v36 = vrot.slane %v1424_v34, 3 }
 0x3a9   :  { %v1428_v37 = vpop.eup %1427  ;;  %v542_v38 = vrot.slane %v1426_v35, 2 }
 0x3aa   :  { %v544_v39 = vrot.slane %v1428_v37, 1  ;;  %v1430_v41 = vpop.eup %1429 }
 0x3ab   :  { %v543_v40 = vsel %vm245_vm2, %v542_v38, %v541_v36 }
 0x3ac   :  { %v545_v42 = vsel %vm248_vm3, %v544_v39, %v543_v40 }
 0x3ad   :  { %v546_v43 = vsel %vm251_vm4, %v1430_v41, %v545_v42 }
 0x3ae   :  { %1275 = vmatmul.mubr.msk.f32.vlgmr.msra.gmra.mrb[4].mxu1 %vm150_vm5, %v546_v43 }
 0x3af   :  { %1374 = vmatpush3.bf16.msra.mxu1 %v1541_v8  ;;  %1296 = vmatprep.mubr.msk.f32.mxu1 %vm1466_vm1, %v1467_v4 }
 0x3b0   :  { %1375 = vmatprep.subr.bf16.mxu1 %v1465_v0 }
 0x3b3   :  { %1377 = vmatpush3.bf16.msra.mxu1 %v1554_v12 }
 0x3b4   :  { %1384 = vmatprep.subr.bf16.mxu1 %v1465_v0 }
 0x481   :  { %v615_v44 = vpop.f32.mrb[4].mxu1 }
 0x482   :  { %v620_v45 = vrot.slane %v615_v44, 4  ;;  %v621_v46 = vrot.slane %v615_v44, 5  ;;  %v622_v47 = vrot.slane %v615_v44, 6  ;;  %v623_v48 = vrot.slane %v615_v44, 7  ;;  %v1276_v49 = vpop.f32.mrb[5].mxu1 }
 0x483   :  { %v936_v49 = vld [vmem:[%s1737_s4] sm:$0xff] }
 0x484   :  { %v628_v50 = vadd.f32 %v620_v45, %v1585_v18  ;;  %v629_v51 = vadd.f32 %v621_v46, %v1587_v19  ;;  %v630_v52 = vadd.f32 %v622_v47, %v1592_v29  ;;  %v631_v53 = vadd.f32 %v623_v48, %v1590_v28 }
 0x486   :  { %1431 = vtanh.f32 %v628_v50  ;;  %v937_v50 = vld [vmem:[%s1737_s4 + $0x8] sm:$0xff] }
 0x487   :  { %1433 = vtanh.f32 %v629_v51  ;;  %v1385_v51 = vpack.c.bf16 %v937_v50, %v936_v49 }
 0x488   :  { %1435 = vtanh.f32 %v630_v52  ;;  %v938_v52 = vld [vmem:[%s1737_s4 + $0x10] sm:$0xff] }
 0x489   :  { %1437 = vtanh.f32 %v631_v53 }
 0x490   :  { %v1432_v54 = vpop.eup %1431 }
 0x491   :  { %v1434_v55 = vpop.eup %1433  ;;  %v640_v56 = vrot.slane %v1432_v54, 4  ;;  %v1031_v54 = vld [vmem:[%s1738_s6] sm:$0xff] }
 0x492   :  { %v1436_v57 = vpop.eup %1435  ;;  %v641_v58 = vrot.slane %v1434_v55, 3  ;;  %v1032_v55 = vld [vmem:[%s1738_s6 + $0x8] sm:$0xff] }
 0x493   :  { %v1438_v59 = vpop.eup %1437  ;;  %v643_v60 = vrot.slane %v1436_v57, 2 }
 0x494   :  { %v642_v61 = vsel %vm245_vm2, %v641_v58, %v640_v56  ;;  %v645_v62 = vrot.slane %v1438_v59, 1  ;;  %v1391_v56 = vpack.c.bf16 %v1032_v55, %v1031_v54 }
 0x495   :  { %v644_v63 = vsel %vm248_vm3, %v643_v60, %v642_v61 }
 0x496   :  { %v646_v1 = vsel %vm251_vm4, %v645_v62, %v644_v63 }
 0x497   :  { %1286 = vmatmul.mubr.msk.f32.vlgmr.msra.gmra.mrb[8].mxu0 %vm150_vm5, %v646_v1 }
 0x498   :  { %1380 = vmatpush3.bf16.msra.mxu0 %v1541_v8  ;;  %1307 = vmatprep.mubr.msk.f32.mxu0 %vm1466_vm1, %v1467_v4 }
 0x499   :  { %1381 = vmatprep.subr.bf16.mxu0 %v1465_v0 }
 0x49c   :  { %1383 = vmatpush3.bf16.msra.mxu0 %v1554_v12 }
 0x49d   :  { %1390 = vmatprep.subr.bf16.mxu0 %v1465_v0 }
 0x56a   :  { %v715_v2 = vpop.f32.mrb[8].mxu0 }
 0x56b   :  { %v720_v3 = vrot.slane %v715_v2, 3  ;;  %v721_v5 = vrot.slane %v715_v2, 4  ;;  %v722_v6 = vrot.slane %v715_v2, 5  ;;  %v723_v7 = vrot.slane %v715_v2, 6  ;;  %v1287_v9 = vpop.f32.mrb[9].mxu0 }
 0x56d   :  { %v728_v10 = vadd.f32 %v720_v3, %v1585_v18  ;;  %v729_v11 = vadd.f32 %v721_v5, %v1587_v19  ;;  %v730_v8 = vadd.f32 %v722_v6, %v1592_v29  ;;  %v731_v13 = vadd.f32 %v723_v7, %v1590_v28 }
 0x56f   :  { %1439 = vtanh.f32 %v728_v10 }
 0x570   :  { %1441 = vtanh.f32 %v729_v11 }
 0x571   :  { %1443 = vtanh.f32 %v730_v8 }
 0x572   :  { %1445 = vtanh.f32 %v731_v13  ;;  %v1034_v13 = vld [vmem:[%s1738_s6 + $0x18] sm:$0xff] }
 0x579   :  { %v1440_v12 = vpop.eup %1439 }
 0x57a   :  { %v1442_v14 = vpop.eup %1441  ;;  %v740_v15 = vrot.slane %v1440_v12, 5 }
 0x57b   :  { %v1444_v16 = vpop.eup %1443  ;;  %v741_v17 = vrot.slane %v1442_v14, 4  ;;  %v1150_v14 = vld [vmem:[%s1739_s5] ss:$0 sm:$0xff] }
 0x57c   :  { %v1446_v20 = vpop.eup %1445  ;;  %v743_v21 = vrot.slane %v1444_v16, 3 }
 0x57d   :  { %v742_v22 = vsel %vm245_vm2, %v741_v17, %v740_v15  ;;  %v745_v23 = vrot.slane %v1446_v20, 2 }
 0x57e   :  { %v744_v24 = vsel %vm248_vm3, %v743_v21, %v742_v22  ;;  %v1152_v21 = vld [vmem:[%s1740_s7] ss:$0 sm:$0xff] }
 0x57f   :  { %v746_v25 = vsel %vm251_vm4, %v745_v23, %v744_v24 }
 0x580   :  { %1297 = vmatmul.mubr.msk.f32.vlgmr.msra.gmra.mrb[6].mxu1 %vm150_vm5, %v746_v25  ;;  %v1154_v25 = vld [vmem:[%s1741_s8] ss:$0 sm:$0xff] }
 0x581   :  { %1318 = vmatprep.mubr.msk.f32.mxu1 %vm1466_vm1, %v1467_v4  ;;  %1386 = vmatpush3.bf16.msra.mxu1 %v1385_v51 }
 0x582   :  { %1387 = vmatprep.subr.bf16.mxu1 %v1465_v0 }
 0x653   :  { %v815_v26 = vpop.f32.mrb[6].mxu1 }
 0x654   :  { %v820_v27 = vrot.slane %v815_v26, 2  ;;  %v821_v30 = vrot.slane %v815_v26, 3  ;;  %v822_v31 = vrot.slane %v815_v26, 4  ;;  %v823_v32 = vrot.slane %v815_v26, 5  ;;  %v1298_v33 = vpop.f32.mrb[7].mxu1 }
 0x656   :  { %v828_v34 = vadd.f32 %v820_v27, %v1585_v18  ;;  %v829_v35 = vadd.f32 %v821_v30, %v1587_v19  ;;  %v830_v36 = vadd.f32 %v822_v31, %v1592_v29  ;;  %v831_v37 = vadd.f32 %v823_v32, %v1590_v28  ;;  %v1155_v27 = vld [vmem:[%s1742_s9] ss:$0 sm:$0xff] }
 0x658   :  { %1447 = vtanh.f32 %v828_v34 }
 0x659   :  { %1449 = vtanh.f32 %v829_v35 }
 0x65a   :  { %1451 = vtanh.f32 %v830_v36 }
 0x65b   :  { %1453 = vtanh.f32 %v831_v37 }
 0x662   :  { %v1448_v38 = vpop.eup %1447 }
 0x663   :  { %v1450_v39 = vpop.eup %1449  ;;  %v840_v40 = vrot.slane %v1448_v38, 6 }
 0x664   :  { %v1452_v41 = vpop.eup %1451  ;;  %v841_v42 = vrot.slane %v1450_v39, 5 }
 0x665   :  { %v1454_v43 = vpop.eup %1453  ;;  %v843_v44 = vrot.slane %v1452_v41, 4 }
 0x666   :  { %v842_v45 = vsel %vm245_vm2, %v841_v42, %v840_v40  ;;  %v845_v46 = vrot.slane %v1454_v43, 3 }
 0x667   :  { %v844_v47 = vsel %vm248_vm3, %v843_v44, %v842_v45 }
 0x668   :  { %v846_v48 = vsel %vm251_vm4, %v845_v46, %v844_v47 }
 0x669   :  { %1308 = vmatmul.mubr.msk.f32.vlgmr.msra.gmra.mrb[10].mxu0 %vm150_vm5, %v846_v48 }
 0x66a   :  { %1329 = vmatprep.mubr.msk.f32.mxu0 %vm1466_vm1, %v1467_v4  ;;  %v939_v4 = vld [vmem:[%s1737_s4 + $0x18] sm:$0xff]  ;;  %1392 = vmatpush3.bf16.msra.mxu0 %v1391_v56 }
 0x66b   :  { %v1388_v53 = vpack.c.bf16 %v939_v4, %v938_v52  ;;  %1393 = vmatprep.subr.bf16.mxu0 %v1465_v0 }
 0x66d   :  { %1389 = vmatpush3.bf16.msra.mxu1 %v1388_v53 }
 0x73c   :  { %v915_v57 = vpop.f32.mrb[10].mxu0 }
 0x73d   :  { %v920_v58 = vrot.slane %v915_v57, 1  ;;  %v921_v59 = vrot.slane %v915_v57, 2  ;;  %v922_v60 = vrot.slane %v915_v57, 3  ;;  %v923_v61 = vrot.slane %v915_v57, 4  ;;  %v1309_v62 = vpop.f32.mrb[11].mxu0 }
 0x73f   :  { %v928_v63 = vadd.f32 %v920_v58, %v1585_v18  ;;  %v929_v1 = vadd.f32 %v921_v59, %v1587_v19  ;;  %v930_v2 = vadd.f32 %v922_v60, %v1592_v29  ;;  %v931_v3 = vadd.f32 %v923_v61, %v1590_v28  ;;  %v1033_v28 = vld [vmem:[%s1738_s6 + $0x10] sm:$0xff] }
 0x740   :  { %v1394_v12 = vpack.c.bf16 %v1034_v13, %v1033_v28 }
 0x741   :  { %1455 = vtanh.f32 %v928_v63 }
 0x742   :  { %1457 = vtanh.f32 %v929_v1  ;;  %1395 = vmatpush3.bf16.msra.mxu0 %v1394_v12 }
 0x743   :  { %1459 = vtanh.f32 %v930_v2 }
 0x744   :  { %1461 = vtanh.f32 %v931_v3 }
 0x74b   :  { %v1456_v5 = vpop.eup %1455 }
 0x74c   :  { %v1458_v0 = vpop.eup %1457  ;;  %v951_v6 = vrot.slane %v1456_v5, 7 }
 0x74d   :  { %v1460_v7 = vpop.eup %1459  ;;  %v952_v9 = vrot.slane %v1458_v0, 6 }
 0x74e   :  { %v1462_v10 = vpop.eup %1461  ;;  %v954_v11 = vrot.slane %v1460_v7, 5 }
 0x74f   :  { %v953_v8 = vsel %vm245_vm2, %v952_v9, %v951_v6  ;;  %v956_v18 = vrot.slane %v1462_v10, 4 }
 0x750   :  { %v955_v19 = vsel %vm248_vm3, %v954_v11, %v953_v8 }
 0x751   :  { %v957_v29 = vsel %vm251_vm4, %v956_v18, %v955_v19 }
 0x752   :  { %1319 = vmatmul.mubr.msk.f32.vlgmr.msra.gmra.mrb[8].mxu1 %vm150_vm5, %v957_v29 }
 0x825   :  { %v1026_v15 = vpop.f32.mrb[8].mxu1 }
 0x826   :  { %v1027_v16 = vadd.f32 %v1150_v14, %v1026_v15  ;;  %v1320_v17 = vpop.f32.mrb[9].mxu1 }
 0x828   :  { %v1030_v20 = vmax.f32 %v1027_v16, 0.0 }
 0x82a   :  { %1330 = vmatmul.mubr.msk.f32.vlgmr.msra.gmra.mrb[12].mxu0 %vm150_vm5, %v1030_v20 }
 0x8fd   :  { %v1111_v22 = vpop.f32.mrb[12].mxu0 }
 0x8fe   :  { %v1112_v23 = vadd.f32 %v1152_v21, %v1111_v22  ;;  %v1331_v24 = vpop.f32.mrb[13].mxu0 }
 0x900   :  { %1463 = vtanh.f32 %v1112_v23 }
 0x90a   :  { %v1464_v26 = vpop.eup %1463 }
 0x90b   :  { %v1123_v30 = vmul.f32 %v1464_v26, %v1154_v25 }
 0x90d   :  { %v1131_v31 = vadd.f32 %v1155_v27, %v1123_v30 }
 0x90f   :  { %1133 = vst.msk [vmem:[%s1743_s10] sm:$0xf] %vm1132_vm6, %v1131_v31 }

</bundles_post_ra>
